<compile_context>
chip_gen: v7x
topology: tpu7x:2x2x1
jax: 0.10.0
libtpu: 0.0.40
codegen_flags: <defaults>
</compile_context>

<pallas_src>
import functools

import jax
import jax.numpy as jnp
from jax.experimental import pallas as pl
from jax.experimental.pallas import tpu as pltpu


_LANE = 128      # vreg lane width
_SUBLANE = 8     # vreg sublane count
_VMEM_LIMIT_BYTES = 32 * 1024 * 1024   # explicit budget; safe on v5e/v6e/v7x


def _round_up(x, m):
    return (x + m - 1) // m * m


# ---------------------------------------------------------------------------
# Phase 1: batched (time-parallel) input projection.
#   gi[t*B + b, :] = src[t, b, :] @ W_fused + b_fused
# ---------------------------------------------------------------------------
def _input_proj_kernel(x_ref, w_ref, b_ref, gi_ref):
    gi_ref[...] = (
        jnp.dot(x_ref[...], w_ref[...], preferred_element_type=jnp.float32)
        + b_ref[...]
    )


# ---------------------------------------------------------------------------
# Phase 2: sequential GRU recurrence, t_chunk timesteps per grid iteration.
# The hidden state lives in the (resident) output block and is written
# unconditionally every chunk.
# ---------------------------------------------------------------------------
def _gru_recurrence_kernel(gi_ref, whh_ref, bhhn_ref, h_ref, *,
                           seq_len, t_chunk, t_pad):
    c = pl.program_id(0)
    h_pad = whh_ref.shape[0]

    @pl.when(c == 0)
    def _():
        h_ref[...] = jnp.zeros_like(h_ref)   # PyTorch default h0 = 0

    # Hoist loop-invariant loads / broadcasts out of the recurrence body.
    whh = whh_ref[...]           # [H_pad, 3*H_pad]
    bhh_n = bhhn_ref[...]        # [1, H_pad]  (n-gate hidden bias only)
    mask_tail = (t_pad != seq_len)

    def step(i, h):
        gi = gi_ref[i]                                          # [B_pad, 3*H_pad]
        gh = jnp.dot(h, whh, preferred_element_type=jnp.float32)  # [B_pad, 3*H_pad]
        i_r = gi[:, :h_pad]
        i_z = gi[:, h_pad:2 * h_pad]
        i_n = gi[:, 2 * h_pad:]
        h_r = gh[:, :h_pad]
        h_z = gh[:, h_pad:2 * h_pad]
        h_n = gh[:, 2 * h_pad:] + bhh_n
        r = jax.nn.sigmoid(i_r + h_r)
        z = jax.nn.sigmoid(i_z + h_z)
        n = jnp.tanh(i_n + r * h_n)
        h_new = n + z * (h - n)              # == (1 - z) * n + z * h
        if mask_tail:
            t = c * t_chunk + i
            h_new = jnp.where(t < seq_len, h_new, h)
        return h_new

    h_final = jax.lax.fori_loop(0, t_chunk, step, h_ref[...], unroll=True)
    h_ref[...] = h_final


def encoder_forward(src, params, t_chunk=32):
    """src: [seq_len, batch, input_feats] float32 -> hidden [1, batch, hid_dim]."""
    seq_len, batch, feats = src.shape
    w_emb = params["w_emb"]          # [E, F]   (PyTorch Linear weight layout)
    b_emb = params["b_emb"]          # [E]
    w_ih = params["w_ih"]            # [3H, E]
    b_ih = params["b_ih"]            # [3H]
    w_hh = params["w_hh"]            # [3H, H]
    b_hh = params["b_hh"]            # [3H]
    hid = w_hh.shape[1]

    h_pad = _round_up(hid, _LANE)
    b_pad = _round_up(batch, _SUBLANE)
    t_chunk = min(t_chunk, seq_len)
    t_pad = _round_up(seq_len, t_chunk)

    f32 = jnp.float32

    # ---- weight prep: fuse embedding Linear into the GRU input projection ----
    # gi = (x @ Wemb^T + b_emb) @ Wih^T + b_ih
    #    = x @ (Wemb^T @ Wih^T) + (b_emb @ Wih^T + b_ih)
    # Dropout is identity in eval mode, so this fusion is exact (up to rounding).
    w_fused = w_emb.T @ w_ih.T                        # [F, 3H]
    b_fused = b_emb @ w_ih.T + b_ih                   # [3H]
    # Fold the purely additive r/z components of b_hh into the fused bias;
    # only the n-gate hidden bias must stay inside the recurrence.
    b_fused = b_fused.at[:2 * hid].add(b_hh[:2 * hid])
    b_hh_n = b_hh[2 * hid:]                           # [H]

    def pad_gate_cols(w):
        # [rows, 3H] -> [rows, 3*H_pad]: each gate gets its own 128-aligned block.
        rows = w.shape[0]
        out = jnp.zeros((rows, 3 * h_pad), f32)
        for g in range(3):
            out = out.at[:, g * h_pad:g * h_pad + hid].set(
                w[:, g * hid:(g + 1) * hid])
        return out

    # NOTE: weights stay f32 for fidelity to the PyTorch module; casting them to
    # bf16 (keeping preferred_element_type=f32 and h in f32) is a further option
    # on v6e/v7x at larger sizes.
    w_fused_p = pad_gate_cols(w_fused.astype(f32))                      # [F, 3*H_pad]
    b_fused_p = pad_gate_cols(b_fused.reshape(1, 3 * hid).astype(f32))  # [1, 3*H_pad]
    w_hh_p = jnp.zeros((h_pad, 3 * h_pad), f32).at[:hid].set(
        pad_gate_cols(w_hh.T.astype(f32)))                              # [H_pad, 3*H_pad]
    b_hh_n_p = jnp.zeros((1, h_pad), f32).at[0, :hid].set(b_hh_n.astype(f32))

    # ---- pad activations to (8, 128)-friendly shapes --------------------------
    src_p = jnp.zeros((t_pad, b_pad, feats), f32).at[:seq_len, :batch].set(
        src.astype(f32))
    x_flat = src_p.reshape(t_pad * b_pad, feats)

    # ---- phase 1: time-parallel input projection (one large MXU matmul) -------
    tm = t_chunk * b_pad
    gi_flat = pl.pallas_call(
        _input_proj_kernel,
        out_shape=jax.ShapeDtypeStruct((t_pad * b_pad, 3 * h_pad), f32),
        grid_spec=pltpu.PrefetchScalarGridSpec(
            num_scalar_prefetch=0,
            grid=(t_pad // t_chunk,),
            in_specs=[
                pl.BlockSpec((tm, feats), lambda i: (i, 0)),          # src rows
                pl.BlockSpec((feats, 3 * h_pad), lambda i: (0, 0)),   # fused W
                pl.BlockSpec((1, 3 * h_pad), lambda i: (0, 0)),       # fused b
            ],
            out_specs=pl.BlockSpec((tm, 3 * h_pad), lambda i: (i, 0)),
        ),
        compiler_params=pltpu.CompilerParams(
            dimension_semantics=("parallel",),      # shardable across TCs on v7x
            vmem_limit_bytes=_VMEM_LIMIT_BYTES),
    )(x_flat, w_fused_p, b_fused_p)
    gi = gi_flat.reshape(t_pad, b_pad, 3 * h_pad)

    # ---- phase 2: sequential recurrence, t_chunk steps per grid iteration -----
    kernel = functools.partial(_gru_recurrence_kernel,
                               seq_len=seq_len, t_chunk=t_chunk, t_pad=t_pad)
    hidden_p = pl.pallas_call(
        kernel,
        out_shape=jax.ShapeDtypeStruct((b_pad, h_pad), f32),
        grid_spec=pltpu.PrefetchScalarGridSpec(
            num_scalar_prefetch=0,
            grid=(t_pad // t_chunk,),
            in_specs=[
                pl.BlockSpec((t_chunk, b_pad, 3 * h_pad), lambda c: (c, 0, 0)),
                pl.BlockSpec((h_pad, 3 * h_pad), lambda c: (0, 0)),   # W_hh^T
                pl.BlockSpec((1, h_pad), lambda c: (0, 0)),           # b_hh (n)
            ],
            out_specs=pl.BlockSpec((b_pad, h_pad), lambda c: (0, 0)),  # resident h
        ),
        compiler_params=pltpu.CompilerParams(
            dimension_semantics=("arbitrary",),     # time axis is sequential
            vmem_limit_bytes=_VMEM_LIMIT_BYTES),
    )(gi, w_hh_p, b_hh_n_p)

    return hidden_p[:batch, :hid][None]   # [1, B, H] like nn.GRU's hidden


def init_params(key, input_feats, emb_dim, hid_dim):
    k = jax.random.split(key, 6)
    s_emb = 1.0 / jnp.sqrt(input_feats)
    s_rnn = 1.0 / jnp.sqrt(hid_dim)
    return {
        "w_emb": jax.random.uniform(k[0], (emb_dim, input_feats), jnp.float32, -s_emb, s_emb),
        "b_emb": jax.random.uniform(k[1], (emb_dim,), jnp.float32, -s_emb, s_emb),
        "w_ih": jax.random.uniform(k[2], (3 * hid_dim, emb_dim), jnp.float32, -s_rnn, s_rnn),
        "b_ih": jax.random.uniform(k[3], (3 * hid_dim,), jnp.float32, -s_rnn, s_rnn),
        "w_hh": jax.random.uniform(k[4], (3 * hid_dim, hid_dim), jnp.float32, -s_rnn, s_rnn),
        "b_hh": jax.random.uniform(k[5], (3 * hid_dim,), jnp.float32, -s_rnn, s_rnn),
    }


def encoder_reference(src, params):
    """Pure-JAX reference replicating PyTorch nn.Linear + nn.GRU (eval mode)."""
    emb = src @ params["w_emb"].T + params["b_emb"]
    hid = params["w_hh"].shape[1]
    batch = src.shape[1]

    def step(h, x_t):
        gi = x_t @ params["w_ih"].T + params["b_ih"]
        gh = h @ params["w_hh"].T + params["b_hh"]
        i_r, i_z, i_n = gi[:, :hid], gi[:, hid:2 * hid], gi[:, 2 * hid:]
        h_r, h_z, h_n = gh[:, :hid], gh[:, hid:2 * hid], gh[:, 2 * hid:]
        r = jax.nn.sigmoid(i_r + h_r)
        z = jax.nn.sigmoid(i_z + h_z)
        n = jnp.tanh(i_n + r * h_n)
        h_new = (1.0 - z) * n + z * h
        return h_new, None

    h0 = jnp.zeros((batch, hid), jnp.float32)
    h_last, _ = jax.lax.scan(step, h0, emb)
    return h_last[None]


if __name__ == "__main__":
    seq_len, batch, input_feats = 8, 2, 8
    emb_dim, hid_dim = 16, 32

    key = jax.random.PRNGKey(0)
    k_src, k_params = jax.random.split(key)
    src = jax.random.normal(k_src, (seq_len, batch, input_feats), jnp.float32)
    params = init_params(k_params, input_feats, emb_dim, hid_dim)

    # TODO(synk): training-mode dropout (stochastic masking) is not implemented;
    # this kernel uses eval/inference semantics (dropout = identity).
    hidden = encoder_forward(src, params)
    jax.block_until_ready(hidden)

    ref = encoder_reference(src, params)
    assert hidden.shape == (1, batch, hid_dim)
    # Fusing the embedding Linear into W_ih changes rounding order slightly.
    assert jnp.allclose(hidden, ref, atol=1e-4, rtol=1e-4), "mismatch vs pure-JAX reference"

    print("KERNEL_OK")
</pallas_src>

<mosaic_0001>
module attributes {stable_mosaic.version = 11 : i64} {
  func.func @_input_proj_kernel(%arg0: i32, %arg1: memref<64x8xf32, #tpu.memory_space<vmem>>, %arg2: memref<8x384xf32, #tpu.memory_space<vmem>>, %arg3: memref<1x384xf32, #tpu.memory_space<vmem>>, %arg4: memref<64x384xf32, #tpu.memory_space<vmem>>) attributes {dimension_semantics = [#tpu.dimension_semantics<parallel>], iteration_bounds = array<i64: 1>, scalar_prefetch = 0 : i64, scratch_operands = 0 : i64, tpu.core_type = #tpu.core_type<tc>, window_params = [{transform_indices = @transform_0, window_bounds = array<i64: 64, 8>}, {pipeline_mode = #tpu.pipeline_mode<synchronous>, transform_indices = @transform_1, window_bounds = array<i64: 8, 384>}, {pipeline_mode = #tpu.pipeline_mode<synchronous>, transform_indices = @transform_2, window_bounds = array<i64: 1, 384>}, {transform_indices = @transform_3, window_bounds = array<i64: 64, 384>}]} {
    %c0 = arith.constant 0 : index
    %c0_0 = arith.constant 0 : index
    %0 = vector.load %arg1[%c0, %c0_0] : memref<64x8xf32, #tpu.memory_space<vmem>>, vector<64x8xf32>
    %c0_1 = arith.constant 0 : index
    %c0_2 = arith.constant 0 : index
    %1 = vector.load %arg2[%c0_1, %c0_2] : memref<8x384xf32, #tpu.memory_space<vmem>>, vector<8x384xf32>
    %cst = arith.constant dense<0.000000e+00> : vector<64x384xf32>
    %2 = tpu.matmul %0, %1, %cst {dimension_numbers = #tpu.dot_dimension_numbers<[1], [0], [0], [1], [0, 0, 1, 1], [], []>} : vector<64x8xf32>, vector<8x384xf32>, vector<64x384xf32> -> vector<64x384xf32>
    %c0_3 = arith.constant 0 : index
    %c0_4 = arith.constant 0 : index
    %3 = vector.load %arg3[%c0_3, %c0_4] : memref<1x384xf32, #tpu.memory_space<vmem>>, vector<1x384xf32>
    %4 = vector.broadcast %3 : vector<1x384xf32> to vector<64x384xf32>
    %5 = arith.addf %2, %4 : vector<64x384xf32>
    %c0_5 = arith.constant 0 : index
    %c0_6 = arith.constant 0 : index
    %6 = vector.load %arg4[%c0_5, %c0_6] : memref<64x384xf32, #tpu.memory_space<vmem>>, vector<64x384xf32>
    tpu.vector_store %arg4[%c0_5, %c0_6], %5 {strides = array<i32>} : memref<64x384xf32, #tpu.memory_space<vmem>>, vector<64x384xf32>,
    return
  }
  func.func @transform_0(%arg0: i32) -> (i32, i32) {
    %c0_i32 = arith.constant 0 : i32
    %c0_i32_0 = arith.constant 0 : i32
    return %arg0, %c0_i32 : i32, i32
  }
  func.func @transform_1(%arg0: i32) -> (i32, i32) {
    %c0_i32 = arith.constant 0 : i32
    %c0_i32_0 = arith.constant 0 : i32
    %c0_i32_1 = arith.constant 0 : i32
    return %c0_i32, %c0_i32_0 : i32, i32
  }
  func.func @transform_2(%arg0: i32) -> (i32, i32) {
    %c0_i32 = arith.constant 0 : i32
    %c0_i32_0 = arith.constant 0 : i32
    %c0_i32_1 = arith.constant 0 : i32
    return %c0_i32, %c0_i32_0 : i32, i32
  }
  func.func @transform_3(%arg0: i32) -> (i32, i32) {
    %c0_i32 = arith.constant 0 : i32
    %c0_i32_0 = arith.constant 0 : i32
    return %arg0, %c0_i32 : i32, i32
  }
}

</mosaic_0001>

<bundles_post_ra>
// kernel: tpu_custom_call.1
= control target key start
LH: loop header
LB: loop body
LE: loop exit
PB: predicated region body
PF: predicated region fallthrough
CT: control target
= control target key end

     0   :  { %vm43_vm0 = vcmask 64512   ;;  %v395_v5 = vmov 0.0   ;;  %s503_s0 = inlined_call_operand.vmem [shape: f32[64,8], index: 0, kind: input, shape index: {}]   ;;  %s504_s1 = inlined_call_operand.vmem [shape: f32[8,384], index: 1, kind: input, shape index: {}]   ;;  %s505_s2 = inlined_call_operand.vmem [shape: f32[1,384], index: 2, kind: input, shape index: {}]   ;;  %s506_s3 = inlined_call_operand.hbm [shape: f32[64,384], index: 3, kind: output, shape index: {}]  }
   0x1   :  { %v24_v0 = vld [vmem:[%s504_s1 + $0x8] sm:$0xff]  ;;  %v23_v1 = vld [vmem:[%s504_s1] sm:$0xff]  ;;  %v21_v3 = vld [vmem:[%s503_s0 + $0x30] sm:$0xff]  ;;  %132 = vmatprep.mubr.f32.mxu0 %v395_v5  ;;  %168 = vmatprep.mubr.f32.mxu1 %v395_v5 }
   0x2   :  { %68 = vmatprep.subr.mxu0 %v24_v0  ;;  %365 = vmatprep.subr.mxu1 %v24_v0  ;;  %v15_v2 = vld [vmem:[%s503_s0] sm:$0xff]  ;;  %v25_v4 = vld [vmem:[%s504_s1 + $0x10] sm:$0xff] }
   0x3   :  { %69 = vmatpush1.msra.mxu0 %v23_v1  ;;  %366 = vmatpush1.msra.mxu1 %v23_v1 }
   0x4   :  { %326 = vmatmul.mubr.msk.f32.vlgmr.msra.gmra.mrb[0].mxu0 %vm43_vm0, %v15_v2  ;;  %332 = vmatmul.mubr.msk.f32.vlgmr.msra.gmra.mrb[0].mxu1 %vm43_vm0, %v21_v3 }
   0x5   :  { %8 = vsyncpa [#allocation3], 0  ;;  %351 = vmatprep.subr.mxu1 %v25_v4  ;;  %138 = vmatprep.mubr.f32.mxu0 %v395_v5  ;;  %v16_v6 = vld [vmem:[%s503_s0 + $0x8] sm:$0xff]  ;;  %v22_v7 = vld [vmem:[%s503_s0 + $0x38] sm:$0xff]  ;;  %v28_v12 = vlaneseq }
   0x6   :  { %352 = vmatpush3.msra.mxu1 %v25_v4  ;;  %174 = vmatprep.mubr.f32.mxu1 %v395_v5  ;;  %v17_v8 = vld [vmem:[%s503_s0 + $0x10] sm:$0xff]  ;;  %v18_v9 = vld [vmem:[%s503_s0 + $0x18] sm:$0xff]  ;;  %v19_v10 = vld [vmem:[%s503_s0 + $0x20] sm:$0xff] }
   0x7   :  { %v20_v11 = vld [vmem:[%s503_s0 + $0x28] sm:$0xff]  ;;  %v29_v13 = vshrl.u32 %v28_v12, 7  ;;  %v26_v15 = vld [vmem:[%s505_s2] sm:$0x7]  ;;  %s396_s0 = smov [#allocation2]  }
   0x8   :  { %327 = vmatmul.mubr.msk.f32.gmra.mrb[2].mxu0 %vm43_vm0, %v16_v6  ;;  %333 = vmatmul.mubr.msk.f32.gmra.mrb[2].mxu1 %vm43_vm0, %v22_v7  ;;  %s315_s2 = sshll.u32 %s396_s0, 4  ;;  %s316_s2 = int_to_ptr.vmem [resolvable:$true] %s315_s2 }
   0x9   :  { %144 = vmatprep.mubr.f32.mxu0 %v395_v5  ;;  %353 = vmatprep.mubr.msk.f32.mxu1 %vm43_vm0, %v15_v2  ;;  %v30_v14 = vsub.s32 0, %v29_v13  ;;  %v34_v16 = vsub.s32 1, %v29_v13  ;;  %v38_v25 = vsub.s32 2, %v29_v13  ;;  %s371_s8 = scalar_lea.vmem %s316_s2, 3072  ;;  %p376_p1 = scmp.lt.s32.totalorder %s316_s2, %s316_s2 }
   0xa   :  { %p372_p0 = scmp.ne.s32.totalorder %s316_s2, %s371_s8  ;;  %p377_p2 = scmp.lt.s32.totalorder %s371_s8, %s371_s8 }
   0xb   :  { %v471_v17 = vrot.slane %v26_v15, %v30_v14  ;;  %v473_v18 = vrot.slane %v26_v15, %v34_v16  ;;  %v39_v34 = vrot.slane %v26_v15, %v38_v25 }
   0xc   :  { %328 = vmatmul.mubr.msk.f32.gmra.mrb[4].mxu0 %vm43_vm0, %v17_v8  ;;  %354 = vmatmul.mubr.msk.f32.vlgmr.msra.gmra.mrb[4].mxu1 %vm43_vm0, %v16_v6  ;;  %p378_p3 = por %p377_p2, %p376_p1 }
   0xd   :  { %150 = vmatprep.mubr.f32.mxu0 %v395_v5  ;;  %356 = vmatprep.mubr.msk.f32.mxu1 %vm43_vm0, %v17_v8 }
   0xe   :  { %p379_p4 = pnand %p378_p3, %p372_p0 }
  0x10   :  { %329 = vmatmul.mubr.msk.f32.gmra.mrb[6].mxu0 %vm43_vm0, %v18_v9  ;;  %357 = vmatmul.mubr.msk.f32.gmra.mrb[6].mxu1 %vm43_vm0, %v18_v9 }
  0x11   :  { %156 = vmatprep.mubr.f32.mxu0 %v395_v5  ;;  %359 = vmatprep.mubr.msk.f32.mxu1 %vm43_vm0, %v19_v10 }
  0x14   :  { %330 = vmatmul.mubr.msk.f32.gmra.mrb[8].mxu0 %vm43_vm0, %v19_v10  ;;  %360 = vmatmul.mubr.msk.f32.gmra.mrb[8].mxu1 %vm43_vm0, %v20_v11 }
  0x15   :  { %162 = vmatprep.mubr.f32.mxu0 %v395_v5  ;;  %362 = vmatprep.mubr.msk.f32.mxu1 %vm43_vm0, %v21_v3 }
  0x18   :  { %331 = vmatmul.mubr.msk.f32.gmra.mrb[10].mxu0 %vm43_vm0, %v20_v11  ;;  %363 = vmatmul.mubr.msk.f32.gmra.mrb[10].mxu1 %vm43_vm0, %v22_v7 }
  0xd7   :  { %v134_v19 = vpop.f32.mrb[0].mxu0  ;;  %v170_v20 = vpop.f32.mrb[0].mxu1 }
  0xd8   :  { %v135_v21 = vadd.f32 %v134_v19, %v471_v17  ;;  %v171_v22 = vadd.f32 %v170_v20, %v471_v17  ;;  %v136_v23 = vpop.f32.mrb[1].mxu0  ;;  %v172_v24 = vpop.f32.mrb[1].mxu1 }
  0xd9   :  { %v137_v26 = vadd.f32 %v136_v23, %v473_v18  ;;  %v173_v27 = vadd.f32 %v172_v24, %v473_v18 }
  0xda   :  { %286 = vst [vmem:[#allocation2] sm:$0xff] %v135_v21  ;;  %304 = vst [vmem:[#allocation2 + $0x90] sm:$0xff] %v171_v22 }
  0xdb   :  { %287 = vst [vmem:[#allocation2 + $0x8] sm:$0xff] %v137_v26  ;;  %305 = vst [vmem:[#allocation2 + $0x98] sm:$0xff] %v173_v27  ;;  %v140_v28 = vpop.f32.mrb[2].mxu0  ;;  %v176_v29 = vpop.f32.mrb[2].mxu1 }
  0xdc   :  { %v141_v30 = vadd.f32 %v140_v28, %v471_v17  ;;  %v177_v31 = vadd.f32 %v176_v29, %v471_v17  ;;  %v142_v32 = vpop.f32.mrb[3].mxu0  ;;  %v178_v33 = vpop.f32.mrb[3].mxu1 }
  0xdd   :  { %v143_v35 = vadd.f32 %v142_v32, %v473_v18  ;;  %v179_v36 = vadd.f32 %v178_v33, %v473_v18 }
  0xde   :  { %289 = vst [vmem:[#allocation2 + $0x18] sm:$0xff] %v141_v30  ;;  %307 = vst [vmem:[#allocation2 + $0xa8] sm:$0xff] %v177_v31 }
  0xdf   :  { %290 = vst [vmem:[#allocation2 + $0x20] sm:$0xff] %v143_v35  ;;  %308 = vst [vmem:[#allocation2 + $0xb0] sm:$0xff] %v179_v36  ;;  %v146_v37 = vpop.f32.mrb[4].mxu0  ;;  %v355_v38 = vpop.f32.mrb[4].mxu1 }
  0xe0   :  { %v147_v39 = vadd.f32 %v146_v37, %v471_v17  ;;  %v253_v40 = vadd.f32 %v355_v38, %v39_v34  ;;  %v148_v41 = vpop.f32.mrb[5].mxu0  ;;  %v247_v42 = vpop.f32.mrb[5].mxu1 }
  0xe1   :  { %v149_v43 = vadd.f32 %v148_v41, %v473_v18  ;;  %v248_v44 = vadd.f32 %v247_v42, %v39_v34 }
  0xe2   :  { %292 = vst [vmem:[#allocation2 + $0x30] sm:$0xff] %v147_v39  ;;  %291 = vst [vmem:[#allocation2 + $0x28] sm:$0xff] %v253_v40 }
  0xe3   :  { %293 = vst [vmem:[#allocation2 + $0x38] sm:$0xff] %v149_v43  ;;  %288 = vst [vmem:[#allocation2 + $0x10] sm:$0xff] %v248_v44  ;;  %v152_v45 = vpop.f32.mrb[6].mxu0  ;;  %v358_v46 = vpop.f32.mrb[6].mxu1 }
  0xe4   :  { %v153_v47 = vadd.f32 %v152_v45, %v471_v17  ;;  %v263_v48 = vadd.f32 %v358_v46, %v39_v34  ;;  %v154_v49 = vpop.f32.mrb[7].mxu0  ;;  %v257_v50 = vpop.f32.mrb[7].mxu1 }
  0xe5   :  { %v155_v51 = vadd.f32 %v154_v49, %v473_v18  ;;  %v258_v52 = vadd.f32 %v257_v50, %v39_v34 }
  0xe6   :  { %295 = vst [vmem:[#allocation2 + $0x48] sm:$0xff] %v153_v47  ;;  %297 = vst [vmem:[#allocation2 + $0x58] sm:$0xff] %v263_v48 }
  0xe7   :  { %296 = vst [vmem:[#allocation2 + $0x50] sm:$0xff] %v155_v51  ;;  %294 = vst [vmem:[#allocation2 + $0x40] sm:$0xff] %v258_v52  ;;  %v158_v53 = vpop.f32.mrb[8].mxu0  ;;  %v361_v54 = vpop.f32.mrb[8].mxu1 }
  0xe8   :  { %v159_v55 = vadd.f32 %v158_v53, %v471_v17  ;;  %v273_v56 = vadd.f32 %v361_v54, %v39_v34  ;;  %v160_v57 = vpop.f32.mrb[9].mxu0  ;;  %v267_v58 = vpop.f32.mrb[9].mxu1 }
  0xe9   :  { %v161_v59 = vadd.f32 %v160_v57, %v473_v18  ;;  %v268_v60 = vadd.f32 %v267_v58, %v39_v34 }
  0xea   :  { %298 = vst [vmem:[#allocation2 + $0x60] sm:$0xff] %v159_v55  ;;  %303 = vst [vmem:[#allocation2 + $0x88] sm:$0xff] %v273_v56 }
  0xeb   :  { %299 = vst [vmem:[#allocation2 + $0x68] sm:$0xff] %v161_v59  ;;  %300 = vst [vmem:[#allocation2 + $0x70] sm:$0xff] %v268_v60  ;;  %v164_v61 = vpop.f32.mrb[10].mxu0  ;;  %v364_v62 = vpop.f32.mrb[10].mxu1 }
  0xec   :  { %v165_v63 = vadd.f32 %v164_v61, %v471_v17  ;;  %v283_v0 = vadd.f32 %v364_v62, %v39_v34  ;;  %v166_v1 = vpop.f32.mrb[11].mxu0  ;;  %v277_v2 = vpop.f32.mrb[11].mxu1 }
  0xed   :  { %v167_v3 = vadd.f32 %v166_v1, %v473_v18  ;;  %v278_v4 = vadd.f32 %v277_v2, %v39_v34 }
  0xee   :  { %301 = vst [vmem:[#allocation2 + $0x78] sm:$0xff] %v165_v63  ;;  %309 = vst [vmem:[#allocation2 + $0xb8] sm:$0xff] %v283_v0 }
  0xef   :  { %302 = vst [vmem:[#allocation2 + $0x80] sm:$0xff] %v167_v3  ;;  %306 = vst [vmem:[#allocation2 + $0xa0] sm:$0xff] %v278_v4 }
  0xf0   :  { %382 = shalt.err (!%p379_p4)
}
  0xf1   :  { %s383_s11 = scalar_lea.hbm %s506_s3, 3072 }
  0xf2   :  { %p384_p5 = scmp.ne.s32.totalorder %s506_s3, %s383_s11  ;;  %p387_p6 = scmp.lt.u32.totalorder %s383_s11, %s506_s3 }
  0xf4   :  { %p389_p7 = pnand %p387_p6, %p384_p5 }
  0xf6   :  { %392 = shalt.err (!%p389_p7)
}
  0xf7   :  { %s397_s16 = smov 384   ;;  %s398_s17 = smov 24  }
  0xf8   :  { %321 = dma.vmem_to_hbm [thread:$0]  %s316_s2, 3072, %s506_s3, [#allocation3], %s397_s16, %s397_s16, %s398_s17  }
  0xf9   :  { %393 = dma.done.wait [#allocation3], 3072  }
  0xfa   :  { %394 = vsyncadd [#allocation3], 4294964224 }
  0xfb   :  { %325 = vsyncpa [#allocation3], 1 }

</bundles_post_ra>
